<compile_context>
chip_gen: v5e
topology: v5e:2x2
jax: 0.10.0
libtpu: 0.0.40
codegen_flags: <defaults>
</compile_context>

<pallas_src>
import functools

import jax
import jax.numpy as jnp
from jax.experimental import pallas as pl
from jax.experimental.pallas import tpu as pltpu

HIDDEN = 256  # in_features_of_q_net for the int-observation branch


def _relu6(x):
    return jnp.clip(x, 0.0, 6.0)


def general_q_kernel(x_ref, w_ref, b_ref, wq_ref, bq_ref, out_ref):
    """One batch tile.

    x_ref  : [Do+Da, Bt]  bf16  transposed input (batch on lanes)
    w_ref  : [2H, Do+Da]  bf16  block-diagonal packed [W_obs^T ; W_act^T]
    b_ref  : [2H, 1]      f32   packed hidden biases (broadcast over lanes)
    wq_ref : [H, 1]       f32   final projection weights
    bq_ref : [1]          f32   final bias (SMEM scalar)
    out_ref: [1, Bt]      f32   lane-dense q row
    """
    # Fused hidden layer: a single MXU matmul (K = Do+Da), f32 accumulation.
    h_cat = jnp.dot(w_ref[...], x_ref[...],
                    preferred_element_type=jnp.float32) + b_ref[...]
    # Split the block-diagonal result, apply ReLU6 per branch, then add.
    h = _relu6(h_cat[:HIDDEN, :]) + _relu6(h_cat[HIDDEN:, :])        # [H, Bt]
    # Final 256 -> 1 projection on the VPU/XLU (keeps the MXU out of a
    # degenerate 1-wide matmul) + scalar bias from SMEM.
    q = jnp.sum(h * wq_ref[...], axis=0, keepdims=True) + bq_ref[0]  # [1, Bt]
    out_ref[...] = q.astype(out_ref.dtype)


def general_q_forward(obs, gen, params, *, batch_tile=None):
    """Fused GeneralQ forward. obs: [B, Do], gen: [B, Da] -> q: [B, 1] (f32)."""
    B, Do = obs.shape
    Bg, Da = gen.shape
    assert B == Bg, (B, Bg)
    Dtot = Do + Da
    w_obs, b_obs, w_act, b_act, w_q, b_q = params

    # ---- parameter packing (layout plumbing, done in the wrapper) ----
    w_packed = jnp.zeros((2 * HIDDEN, Dtot), jnp.float32)
    w_packed = w_packed.at[:HIDDEN, :Do].set(w_obs.T)
    w_packed = w_packed.at[HIDDEN:, Do:].set(w_act.T)
    w_packed = w_packed.astype(jnp.bfloat16)                       # [2H, Dtot]
    b_packed = jnp.concatenate(
        [b_obs.reshape(HIDDEN, 1), b_act.reshape(HIDDEN, 1)], axis=0
    ).astype(jnp.float32)                                          # [2H, 1]
    wq_col = w_q.reshape(HIDDEN, 1).astype(jnp.float32)            # [H, 1]
    bq = b_q.reshape(1).astype(jnp.float32)                        # [1] (SMEM)

    # ---- batch tiling: lane-dense tiles (multiple of 128), capped at 512 rows
    #      (well inside v7x's 64 MiB VMEM), >=2 grid steps when possible so
    #      pipelining / megacore sharding can kick in. ----
    if batch_tile is None:
        b128 = ((B + 127) // 128) * 128
        if b128 >= 1024 and b128 % 512 == 0:
            batch_tile = 512
        elif b128 >= 512 and b128 % 256 == 0:
            batch_tile = 256
        else:
            batch_tile = 128
    B_pad = ((B + batch_tile - 1) // batch_tile) * batch_tile
    num_tiles = B_pad // batch_tile

    # Single concatenated input stream (one DMA stream instead of two),
    # zero-padded for ragged batches, transposed so batch is on lanes.
    x = jnp.concatenate([obs, gen], axis=1)                        # [B, Dtot]
    if B_pad != B:
        x = jnp.pad(x, ((0, B_pad - B), (0, 0)))
    x_t = x.T.astype(jnp.bfloat16)                                 # [Dtot, B_pad]

    out = pl.pallas_call(
        general_q_kernel,
        out_shape=jax.ShapeDtypeStruct((1, B_pad), jnp.float32),
        grid_spec=pltpu.PrefetchScalarGridSpec(
            num_scalar_prefetch=0,
            grid=(num_tiles,),
            in_specs=[
                pl.BlockSpec((Dtot, batch_tile), lambda i: (0, i)),      # x^T tile
                pl.BlockSpec((2 * HIDDEN, Dtot), lambda i: (0, 0)),      # packed W
                pl.BlockSpec((2 * HIDDEN, 1), lambda i: (0, 0)),         # packed b
                pl.BlockSpec((HIDDEN, 1), lambda i: (0, 0)),             # w_q
                pl.BlockSpec(memory_space=pltpu.MemorySpace.SMEM),       # b_q
            ],
            out_specs=pl.BlockSpec((1, batch_tile), lambda i: (0, i)),
        ),
        compiler_params=pltpu.CompilerParams(
            dimension_semantics=("parallel",)),
    )(x_t, w_packed, b_packed, wq_col, bq)

    return out[0, :B].reshape(B, 1)


def init_params(key, obs_features, action_features):
    """Deterministic synthetic init (PyTorch nn.Linear-style, weights [in, out])."""
    ks = jax.random.split(key, 6)

    def linear(kw, kb, fan_in, fan_out):
        bound = 1.0 / (fan_in ** 0.5)
        w = jax.random.uniform(kw, (fan_in, fan_out), jnp.float32, -bound, bound)
        b = jax.random.uniform(kb, (fan_out,), jnp.float32, -bound, bound)
        return w, b

    w_obs, b_obs = linear(ks[0], ks[1], obs_features, HIDDEN)
    w_act, b_act = linear(ks[2], ks[3], action_features, HIDDEN)
    w_q, b_q = linear(ks[4], ks[5], HIDDEN, 1)
    return (w_obs, b_obs, w_act, b_act, w_q, b_q)


def general_q_reference_f32(obs, gen, params):
    w_obs, b_obs, w_act, b_act, w_q, b_q = params
    h_obs = _relu6(obs @ w_obs + b_obs)
    h_act = _relu6(gen @ w_act + b_act)
    return (h_obs + h_act) @ w_q + b_q


def general_q_reference_mixed(obs, gen, params):
    """Reference matching the kernel's precision (bf16 matmul operands,
    f32 accumulation / bias / relu6 / final reduction)."""
    w_obs, b_obs, w_act, b_act, w_q, b_q = params
    f = lambda a: a.astype(jnp.bfloat16).astype(jnp.float32)
    h_obs = _relu6(f(obs) @ f(w_obs) + b_obs)
    h_act = _relu6(f(gen) @ f(w_act) + b_act)
    return (h_obs + h_act) @ w_q + b_q


if __name__ == "__main__":
    B = 256
    OBS_FEATURES = 32
    ACTION_FEATURES = 16

    key = jax.random.PRNGKey(0)
    k_obs, k_gen, k_params = jax.random.split(key, 3)

    obs = jax.random.normal(k_obs, (B, OBS_FEATURES), jnp.float32)
    gen = jax.random.normal(k_gen, (B, ACTION_FEATURES), jnp.float32)
    params = init_params(k_params, OBS_FEATURES, ACTION_FEATURES)

    fwd = jax.jit(general_q_forward, static_argnames=("batch_tile",))

    # Tiled path: batch_tile=128 -> grid=(2,), lane-dense blocks.
    q = jax.block_until_ready(fwd(obs, gen, params, batch_tile=128))
    assert q.shape == (B, 1), q.shape

    q_ref_mixed = general_q_reference_mixed(obs, gen, params)
    q_ref_f32 = general_q_reference_f32(obs, gen, params)
    assert jnp.allclose(q, q_ref_mixed, atol=2e-3, rtol=2e-3), (
        float(jnp.max(jnp.abs(q - q_ref_mixed))))
    assert jnp.allclose(q, q_ref_f32, atol=5e-2, rtol=5e-2), (
        float(jnp.max(jnp.abs(q - q_ref_f32))))

    # Ragged / tiny batch path (padded to one 128-lane tile internally).
    obs_s, gen_s = obs[:5], gen[:5]
    q_s = jax.block_until_ready(fwd(obs_s, gen_s, params))
    assert q_s.shape == (5, 1), q_s.shape
    assert jnp.allclose(q_s, q_ref_mixed[:5], atol=2e-3, rtol=2e-3)

    print("KERNEL_OK")
</pallas_src>

<mosaic_0001>
module attributes {stable_mosaic.version = 11 : i64} {
  func.func @general_q_kernel(%arg0: i32, %arg1: memref<48x128xbf16, #tpu.memory_space<vmem>>, %arg2: memref<512x48xbf16, #tpu.memory_space<vmem>>, %arg3: memref<512x1xf32, #tpu.memory_space<vmem>>, %arg4: memref<256x1xf32, #tpu.memory_space<vmem>>, %arg5: memref<1xf32, #tpu.memory_space<smem>>, %arg6: memref<1x128xf32, #tpu.memory_space<vmem>>) attributes {dimension_semantics = [#tpu.dimension_semantics<parallel>], iteration_bounds = array<i64: 2>, scalar_prefetch = 0 : i64, scratch_operands = 0 : i64, tpu.core_type = #tpu.core_type<tc>, window_params = [{transform_indices = @transform_0, window_bounds = array<i64: 48, 128>}, {pipeline_mode = #tpu.pipeline_mode<synchronous>, transform_indices = @transform_1, window_bounds = array<i64: 512, 48>}, {pipeline_mode = #tpu.pipeline_mode<synchronous>, transform_indices = @transform_2, window_bounds = array<i64: 512, 1>}, {pipeline_mode = #tpu.pipeline_mode<synchronous>, transform_indices = @transform_3, window_bounds = array<i64: 256, 1>}, {transform_indices = @transform_4, window_bounds = array<i64: 1>}, {transform_indices = @transform_5, window_bounds = array<i64: 1, 128>}]} {
    %c0 = arith.constant 0 : index
    %c0_0 = arith.constant 0 : index
    %0 = vector.load %arg2[%c0, %c0_0] : memref<512x48xbf16, #tpu.memory_space<vmem>>, vector<512x48xbf16>
    %c0_1 = arith.constant 0 : index
    %c0_2 = arith.constant 0 : index
    %1 = vector.load %arg1[%c0_1, %c0_2] : memref<48x128xbf16, #tpu.memory_space<vmem>>, vector<48x128xbf16>
    %cst = arith.constant dense<0.000000e+00> : vector<512x128xf32>
    %2 = tpu.matmul %0, %1, %cst {dimension_numbers = #tpu.dot_dimension_numbers<[1], [0], [0], [1], [0, 0, 1, 1], [], []>} : vector<512x48xbf16>, vector<48x128xbf16>, vector<512x128xf32> -> vector<512x128xf32>
    %c0_3 = arith.constant 0 : index
    %c0_4 = arith.constant 0 : index
    %3 = vector.load %arg3[%c0_3, %c0_4] : memref<512x1xf32, #tpu.memory_space<vmem>>, vector<512x1xf32>
    %4 = vector.broadcast %3 : vector<512x1xf32> to vector<512x128xf32>
    %5 = arith.addf %2, %4 : vector<512x128xf32>
    %6 = vector.extract_strided_slice %5 {offsets = [0, 0], sizes = [256, 128], strides = [1, 1]} : vector<512x128xf32> to vector<256x128xf32>
    %cst_5 = arith.constant 0.000000e+00 : f32
    %cst_6 = arith.constant 6.000000e+00 : f32
    %7 = vector.broadcast %cst_5 : f32 to vector<256x128xf32>
    %8 = arith.maximumf %7, %6 : vector<256x128xf32>
    %9 = vector.broadcast %cst_6 : f32 to vector<256x128xf32>
    %10 = arith.minimumf %9, %8 : vector<256x128xf32>
    %11 = vector.extract_strided_slice %5 {offsets = [256, 0], sizes = [256, 128], strides = [1, 1]} : vector<512x128xf32> to vector<256x128xf32>
    %cst_7 = arith.constant 0.000000e+00 : f32
    %cst_8 = arith.constant 6.000000e+00 : f32
    %12 = vector.broadcast %cst_7 : f32 to vector<256x128xf32>
    %13 = arith.maximumf %12, %11 : vector<256x128xf32>
    %14 = vector.broadcast %cst_8 : f32 to vector<256x128xf32>
    %15 = arith.minimumf %14, %13 : vector<256x128xf32>
    %16 = arith.addf %10, %15 : vector<256x128xf32>
    %c0_9 = arith.constant 0 : index
    %c0_10 = arith.constant 0 : index
    %17 = vector.load %arg4[%c0_9, %c0_10] : memref<256x1xf32, #tpu.memory_space<vmem>>, vector<256x1xf32>
    %18 = vector.broadcast %17 : vector<256x1xf32> to vector<256x128xf32>
    %19 = arith.mulf %16, %18 : vector<256x128xf32>
    %cst_11 = arith.constant dense<0.000000e+00> : vector<128xf32>
    %20 = vector.multi_reduction <add>, %19, %cst_11 [0] : vector<256x128xf32> to vector<128xf32>
    %21 = vector.shape_cast %20 : vector<128xf32> to vector<1x128xf32>
    %c0_12 = arith.constant 0 : index
    %22 = memref.load %arg5[%c0_12] : memref<1xf32, #tpu.memory_space<smem>>
    %23 = vector.broadcast %22 : f32 to vector<1x128xf32>
    %24 = arith.addf %21, %23 : vector<1x128xf32>
    %c0_13 = arith.constant 0 : index
    %c0_14 = arith.constant 0 : index
    %25 = vector.load %arg6[%c0_13, %c0_14] : memref<1x128xf32, #tpu.memory_space<vmem>>, vector<1x128xf32>
    tpu.vector_store %arg6[%c0_13, %c0_14], %24 {strides = array<i32>} : memref<1x128xf32, #tpu.memory_space<vmem>>, vector<1x128xf32>,
    return
  }
  func.func @transform_0(%arg0: i32) -> (i32, i32) {
    %c0_i32 = arith.constant 0 : i32
    %c0_i32_0 = arith.constant 0 : i32
    return %c0_i32, %arg0 : i32, i32
  }
  func.func @transform_1(%arg0: i32) -> (i32, i32) {
    %c0_i32 = arith.constant 0 : i32
    %c0_i32_0 = arith.constant 0 : i32
    %c0_i32_1 = arith.constant 0 : i32
    return %c0_i32, %c0_i32_0 : i32, i32
  }
  func.func @transform_2(%arg0: i32) -> (i32, i32) {
    %c0_i32 = arith.constant 0 : i32
    %c0_i32_0 = arith.constant 0 : i32
    %c0_i32_1 = arith.constant 0 : i32
    return %c0_i32, %c0_i32_0 : i32, i32
  }
  func.func @transform_3(%arg0: i32) -> (i32, i32) {
    %c0_i32 = arith.constant 0 : i32
    %c0_i32_0 = arith.constant 0 : i32
    %c0_i32_1 = arith.constant 0 : i32
    return %c0_i32, %c0_i32_0 : i32, i32
  }
  func.func @transform_4(%arg0: i32) -> i32 {
    %c0_i32 = arith.constant 0 : i32
    %c0_i32_0 = arith.constant 0 : i32
    return %c0_i32 : i32
  }
  func.func @transform_5(%arg0: i32) -> (i32, i32) {
    %c0_i32 = arith.constant 0 : i32
    %c0_i32_0 = arith.constant 0 : i32
    return %c0_i32, %arg0 : i32, i32
  }
}

</mosaic_0001>

<bundles_post_ra>
// kernel: general_q_forward.1
= control target key start
LH: loop header
LB: loop body
LE: loop exit
PB: predicated region body
PF: predicated region fallthrough
CT: control target
= control target key end

     0   :  { %s2867_s0 = inlined_call_operand.vmem [shape: bf16[48,256], index: 0, kind: input, shape index: {}]   ;;  %s2868_s1 = inlined_call_operand.vmem [shape: bf16[512,48], index: 1, kind: input, shape index: {}]   ;;  %s2869_s2 = inlined_call_operand.vmem [shape: f32[512,1], index: 2, kind: input, shape index: {}]   ;;  %s2870_s3 = inlined_call_operand.vmem [shape: f32[256,1], index: 3, kind: input, shape index: {}]   ;;  %s2871_s4 = inlined_call_operand.<no memory space> [shape: f32[1], index: 4, kind: input, shape index: {}]   ;;  %s2872_s5 = inlined_call_operand.hbm [shape: f32[1,256], index: 5, kind: output, shape index: {}]  }
   0x1   :  { %10 = sst [smem:[#allocation2]] %s2871_s4 }
   0x2   :  { %11 = vsyncpa [#allocation5], 0 }
   0x3   :  { %13 = vsyncpa [#allocation5 + $0x1], 0  ;;  %s2050_s20 = smov 0   ;;  %s2052_s21 = smov 0  }
   0x4   :  { %s2054_s22 = smov 0   ;;  %s2056_s23 = smov 0  }
   0x5 LB: > { %s1683_s4 = sadd.s32 4294967295, %s2014_s23   ;;  %s1684_s24 = sadd.s32 4294967294, %s2014_s23   ;;  %s2014_s23 = sphi %s2056_s23, %s2904_s23   ;;  %s2010_s22 = sphi %s2054_s22, %s2903_s22   ;;  %s2006_s21 = sphi %s2052_s21, %s2902_s21   ;;  %s2002_s20 = sphi %s2050_s20, %s2901_s20  }
   0x6   : > { %s2073_s25 = sadd.s32 1, %s2014_s23   ;;  %s26_s26 = sadd.s32 1, %s2010_s22 }
   0x7   : > { %s23_s27 = ssub.s32 %s2014_s23, %s2073_s25  ;;  %p33_p0 = scmp.ne.s32.totalorder %s2010_s22, %s2006_s21 }
   0x8   : > { %p24_p1 = scmp.eq.s32.totalorder %s23_s27, 0  ;;  %p34_p2 = scmp.eq.s32.totalorder %s2014_s23, 0 }
   0x9   : > { %p147_p3 = scmp.eq.s32.totalorder %s1683_s4, 1  ;;  %p152_p4 = scmp.ne.s32.totalorder %s2006_s21, %s2002_s20 }
   0xa   : > { %s2086_s28 = scalar_select %p24_p1, %s2010_s22, %s26_s26  }
   0xb   : > { %p35_p5 = por %p34_p2, %p33_p0  ;;  %p2088_p6 = por %p147_p3, %p33_p0 }
   0xc   : > { %p153_p7 = scmp.eq.s32.totalorder %s1684_s24, 1  ;;  %p1686_p9 = scmp.ge.s32.totalorder %s2014_s23, 2 }
   0xe   : > { %p2092_p8 = por %p153_p7, %p152_p4  ;;  %181 = sbr.rel (%p1686_p9) target bundleno = 30 (0x1e), region = 32 }
  0x13   : > { %184 = sbr.rel (!%p35_p5) target bundleno = 30 (0x1e), region = 36  ;;  %s186_s6 = sand.u32 (%p35_p5), 1, %s2010_s22  }
  0x14   : > { %s1687_s7 = sshll.u32 (%p35_p5), %s2014_s23, 2  ;;  %s1907_s8 = smul.u32 (%p35_p5), 24, %s186_s6 }
  0x15   : > { %s190_s11 = scalar_lea.vmem (%p35_p5), %s2867_s0, %s1687_s7 }
  0x16   : > { %v207_v0 = vld [vmem:[%s190_s11] sm:$0xf] (%p35_p5)  ;;  %v209_v1 = vld [vmem:[%s190_s11 + $0x8] sm:$0xf] (%p35_p5)  ;;  %v211_v2 = vld [vmem:[%s190_s11 + $0x10] sm:$0xf] (%p35_p5) }
  0x17   : > { %s188_s12 = scalar_lea.vmem (%p35_p5), [#allocation3], %s1907_s8  ;;  %v213_v3 = vld [vmem:[%s190_s11 + $0x18] sm:$0xf] (%p35_p5)  ;;  %v215_v4 = vld [vmem:[%s190_s11 + $0x20] sm:$0xf] (%p35_p5) }
  0x18   : > { %208 = vst [vmem:[%s188_s12] sm:$0xf] %v207_v0  ;;  %v217_v5 = vld [vmem:[%s190_s11 + $0x28] sm:$0xf] }
  0x19   : > { %210 = vst [vmem:[%s188_s12 + $0x4] sm:$0xf] %v209_v1 }
  0x1a   : > { %212 = vst [vmem:[%s188_s12 + $0x8] sm:$0xf] %v211_v2 }
  0x1b   : > { %214 = vst [vmem:[%s188_s12 + $0xc] sm:$0xf] %v213_v3 }
  0x1c   : > { %216 = vst [vmem:[%s188_s12 + $0x10] sm:$0xf] %v215_v4 }
  0x1d   : > { %218 = vst [vmem:[%s188_s12 + $0x14] sm:$0xf] %v217_v5 }
  0x1e PF: > { %p1688_p10 = scmp.ge.s32.totalorder %s2014_s23, 1  ;;  %p253_p11 = scmp.lt.s32.totalorder %s2014_s23, 3 }
  0x20   : > { %p254_p12 = pnand %p1688_p10, %p253_p11 }
  0x22   : > { %257 = sbr.rel (%p254_p12) target bundleno = 430 (0x1ae), region = 77 }
  0x27   : > { %v361_v6 = vld [vmem:[%s2869_s2 + $0x20] sm:$0xff]  ;;  %v359_v7 = vld [vmem:[%s2869_s2 + $0x10] sm:$0xff]  ;;  %s2116_s19 = sand.u32 1, %s2006_s21   ;;  %v2016_v9 = vmov 0   ;;  %v362_v12 = vld [vmem:[%s2869_s2 + $0x28] sm:$0xff]  ;;  %vm919_vm0 = vcmask 392192   ;;  %s1619_s18 = scalar_lea.hbm %s2872_s5, %s1683_s4 }
  0x28   : > { %v357_v8 = vld [vmem:[%s2869_s2] sm:$0xff]  ;;  %1951 = vset.pattern.permute.xlu2 %v2016_v9  ;;  %1950 = vset.pattern.permute.xlu1 %v2016_v9  ;;  %s1908_s24 = smul.u32 24, %s2116_s19  ;;  %v360_v13 = vld [vmem:[%s2869_s2 + $0x18] sm:$0xff]  ;;  %v358_v14 = vld [vmem:[%s2869_s2 + $0x8] sm:$0xff]  ;;  %s1606_s15 = sld [smem:[#allocation2]] }
  0x29   : > { %1949 = vset.pattern.permute.xlu0 %v2016_v9  ;;  %443 = vperm.xlu2 %1951, %v361_v6   ;;  %v1863_v16 = vld [vmem:[%s2868_s1] sm:$0xff]  ;;  %v364_v18 = vld [vmem:[%s2869_s2 + $0x38] sm:$0xff]  ;;  %v363_v19 = vld [vmem:[%s2869_s2 + $0x30] sm:$0xff]  ;;  %s1623_s27 = sshll.u32 %s1619_s18, 4  ;;  %s1611_s6 = scalar_lea.sflag [#allocation5], %s2116_s19  ;;  %s1624_s27 = int_to_ptr.hbm [resolvable:$true] %s1623_s27 }
  0x2a   : > { %433 = vperm.xlu1 %1950, %v359_v7   ;;  %423 = vperm.xlu0 %1949, %v357_v8   ;;  %s262_s26 = scalar_lea.vmem [#allocation3], %s1908_s24  ;;  %v365_v17 = vld [vmem:[%s2869_s2 + $0x40] sm:$0xff]  ;;  %v368_v23 = vld [vmem:[%s2869_s2 + $0x58] sm:$0xff]  ;;  %v367_v24 = vld [vmem:[%s2869_s2 + $0x50] sm:$0xff]  ;;  %s285_s24 = scalar_lea.vmem [#allocation4], %s2116_s19 }
  0x2b   : > { %v1897_v10 = vld [vmem:[%s262_s26 + $0x10] sm:$0xff]  ;;  %v1896_v11 = vld [vmem:[%s262_s26 + $0x8] sm:$0xff]  ;;  %v1895_v15 = vld [vmem:[%s262_s26] sm:$0xff]  ;;  %s1621_s26 = sshll.u32 %s285_s24, 4  ;;  %s1966_s7 = sshra.s32 %s1624_s27, 4  ;;  %s1622_s26 = int_to_ptr.vmem [resolvable:$true] %s1621_s26  ;;  %s1967_s7 = int_to_ptr.hbm [resolvable:$true] %s1966_s7 }
  0x2c   : > { %1021 = vmatpush.bf16.msra.mxu0 %v1897_v10  ;;  %1898 = vmatpush.bf16.msra.mxu1 %v1897_v10  ;;  %v1871_v20 = vld [vmem:[%s2868_s1 + $0x40] sm:$0xff]  ;;  %v366_v25 = vld [vmem:[%s2869_s2 + $0x48] sm:$0xff]  ;;  %v371_v27 = vld [vmem:[%s2869_s2 + $0x70] sm:$0xff]  ;;  %s1968_s8 = scalar_lea.hbm %s1967_s7, 1  ;;  %s1972_s10 = scalar_lea.hbm %s2872_s5, 2 }
  0x2d   : > { %1899 = vmatpush.bf16.msra.mxu2 %v1897_v10  ;;  %1900 = vmatpush.bf16.msra.mxu3 %v1897_v10  ;;  %v1879_v21 = vld [vmem:[%s2868_s1 + $0x80] sm:$0xff]  ;;  %v1864_v26 = vld [vmem:[%s2868_s1 + $0x8] sm:$0xff]  ;;  %v372_v35 = vld [vmem:[%s2869_s2 + $0x78] sm:$0xff]  ;;  %p1969_p13 = scmp.ne.s32.totalorder %s1967_s7, %s1968_s8  ;;  %p1973_p2 = scmp.lt.s32.totalorder %s1967_s7, %s2872_s5 }
  0x2e   : > { %v1887_v22 = vld [vmem:[%s2868_s1 + $0xc0] sm:$0xff]  ;;  %v370_v28 = vld [vmem:[%s2869_s2 + $0x68] sm:$0xff]  ;;  %v1865_v36 = vld [vmem:[%s2868_s1 + $0x10] sm:$0xff]  ;;  %p1974_p3 = scmp.lt.s32.totalorder %s1972_s10, %s1968_s8 }
  0x2f   : > { %v369_v29 = vld [vmem:[%s2869_s2 + $0x60] sm:$0xff]  ;;  %v1872_v30 = vld [vmem:[%s2868_s1 + $0x48] sm:$0xff]  ;;  %v376_v38 = vld [vmem:[%s2869_s2 + $0x98] sm:$0xff]  ;;  %p1970_p0 = pnand %p1969_p13, %p2088_p6 }
  0x30   : > { %1022 = vmatpush.bf16.msra.mxu0 %v1896_v11  ;;  %1901 = vmatpush.bf16.msra.mxu1 %v1896_v11  ;;  %v1880_v31 = vld [vmem:[%s2868_s1 + $0x88] sm:$0xff]  ;;  %v373_v34 = vld [vmem:[%s2869_s2 + $0x80] sm:$0xff]  ;;  %v375_v39 = vld [vmem:[%s2869_s2 + $0x90] sm:$0xff]  ;;  %p1975_p4 = por %p1974_p3, %p1973_p2 }
  0x31   : > { %448 = vperm.xlu2 %1951, %v362_v12   ;;  %1902 = vmatpush.bf16.msra.mxu2 %v1896_v11  ;;  %v1888_v32 = vld [vmem:[%s2868_s1 + $0xc8] sm:$0xff]  ;;  %v377_v37 = vld [vmem:[%s2869_s2 + $0xa0] sm:$0xff]  ;;  %v1873_v40 = vld [vmem:[%s2868_s1 + $0x50] sm:$0xff]  ;;  %p1971_p1 = pneg %p1970_p0 }
  0x32   : > { %438 = vperm.xlu1 %1950, %v360_v13   ;;  %428 = vperm.xlu0 %1949, %v358_v14   ;;  %v374_v33 = vld [vmem:[%s2869_s2 + $0x88] sm:$0xff]  ;;  %v1881_v41 = vld [vmem:[%s2868_s1 + $0x90] sm:$0xff]  ;;  %v380_v43 = vld [vmem:[%s2869_s2 + $0xb8] sm:$0xff] }
  0x33   : > { %1903 = vmatpush.bf16.msra.mxu3 %v1896_v11  ;;  %v1889_v42 = vld [vmem:[%s2868_s1 + $0xd0] sm:$0xff]  ;;  %v378_v45 = vld [vmem:[%s2869_s2 + $0xa8] sm:$0xff]  ;;  %v1866_v46 = vld [vmem:[%s2868_s1 + $0x18] sm:$0xff]  ;;  %p1976_p5 = pnand %p1975_p4, %p1971_p1 }
  0x34   : > { %1023 = vmatpush.bf16.msra.mxu0 %v1895_v15  ;;  %1904 = vmatpush.bf16.msra.mxu1 %v1895_v15  ;;  %v379_v44 = vld [vmem:[%s2869_s2 + $0xb0] sm:$0xff]  ;;  %v382_v48 = vld [vmem:[%s2869_s2 + $0xc8] sm:$0xff]  ;;  %v381_v49 = vld [vmem:[%s2869_s2 + $0xc0] sm:$0xff] }
  0x35   : > { %1905 = vmatpush.bf16.msra.mxu2 %v1895_v15  ;;  %v383_v47 = vld [vmem:[%s2869_s2 + $0xd0] sm:$0xff]  ;;  %v1874_v50 = vld [vmem:[%s2868_s1 + $0x58] sm:$0xff]  ;;  %v386_v53 = vld [vmem:[%s2869_s2 + $0xe8] sm:$0xff] }
  0x36   : > { %v1882_v51 = vld [vmem:[%s2868_s1 + $0x98] sm:$0xff]  ;;  %v385_v54 = vld [vmem:[%s2869_s2 + $0xe0] sm:$0xff]  ;;  %v387_v59 = vld [vmem:[%s2869_s2 + $0xf0] sm:$0xff] }
  0x37   : > { %1906 = vmatpush.bf16.msra.mxu3 %v1895_v15  ;;  %1829 = vmatmul.msk.bf16.vlgmr.msra.gmra.mxu0 %vm919_vm0, %v1863_v16  ;;  %v1890_v52 = vld [vmem:[%s2868_s1 + $0xd8] sm:$0xff]  ;;  %v1867_v56 = vld [vmem:[%s2868_s1 + $0x20] sm:$0xff]  ;;  %v391_v0 = vld [vmem:[%s2869_s2 + $0x110] sm:$0xff] }
  0x38   : > { %1837 = vmatmul.msk.bf16.vlgmr.msra.gmra.mxu1 %vm919_vm0, %v1871_v20  ;;  %1845 = vmatmul.msk.bf16.vlgmr.msra.gmra.mxu2 %vm919_vm0, %v1879_v21  ;;  %v384_v55 = vld [vmem:[%s2869_s2 + $0xd8] sm:$0xff]  ;;  %v389_v57 = vld [vmem:[%s2869_s2 + $0x100] sm:$0xff]  ;;  %v390_v1 = vld [vmem:[%s2869_s2 + $0x108] sm:$0xff] }
  0x39   : > { %463 = vperm.xlu2 %1951, %v365_v17   ;;  %v388_v58 = vld [vmem:[%s2869_s2 + $0xf8] sm:$0xff]  ;;  %v1875_v60 = vld [vmem:[%s2868_s1 + $0x60] sm:$0xff]  ;;  %v1868_v3 = vld [vmem:[%s2868_s1 + $0x28] sm:$0xff] }
  0x3a   : > { %458 = vperm.xlu1 %1950, %v364_v18   ;;  %453 = vperm.xlu0 %1949, %v363_v19   ;;  %v1883_v61 = vld [vmem:[%s2868_s1 + $0xa0] sm:$0xff]  ;;  %v392_v63 = vld [vmem:[%s2869_s2 + $0x118] sm:$0xff]  ;;  %v395_v4 = vld [vmem:[%s2869_s2 + $0x130] sm:$0xff] }
  0x3b   : > { %1853 = vmatmul.msk.bf16.vlgmr.msra.gmra.mxu3 %vm919_vm0, %v1887_v22  ;;  %v1891_v62 = vld [vmem:[%s2868_s1 + $0xe0] sm:$0xff]  ;;  %v394_v5 = vld [vmem:[%s2869_s2 + $0x128] sm:$0xff]  ;;  %v396_v13 = vld [vmem:[%s2869_s2 + $0x138] sm:$0xff] }
  0x3c   : > { %v393_v6 = vld [vmem:[%s2869_s2 + $0x120] sm:$0xff]  ;;  %v1876_v7 = vld [vmem:[%s2868_s1 + $0x68] sm:$0xff]  ;;  %v1869_v15 = vld [vmem:[%s2868_s1 + $0x30] sm:$0xff] }
  0x3d   : > { %v1884_v8 = vld [vmem:[%s2868_s1 + $0xa8] sm:$0xff]  ;;  %v397_v12 = vld [vmem:[%s2869_s2 + $0x140] sm:$0xff]  ;;  %v400_v17 = vld [vmem:[%s2869_s2 + $0x158] sm:$0xff] }
  0x3e   : > { %v1892_v9 = vld [vmem:[%s2868_s1 + $0xe8] sm:$0xff]  ;;  %v401_v16 = vld [vmem:[%s2869_s2 + $0x160] sm:$0xff]  ;;  %v399_v18 = vld [vmem:[%s2869_s2 + $0x150] sm:$0xff] }
  0x3f   : > { %v398_v11 = vld [vmem:[%s2869_s2 + $0x148] sm:$0xff]  ;;  %v1877_v19 = vld [vmem:[%s2868_s1 + $0x70] sm:$0xff] }
  0x40   : > { %v1885_v20 = vld [vmem:[%s2868_s1 + $0xb0] sm:$0xff] }
  0x41   : > { %478 = vperm.xlu2 %1951, %v368_v23   ;;  %v1893_v21 = vld [vmem:[%s2868_s1 + $0xf0] sm:$0xff] }
  0x42   : > { %473 = vperm.xlu1 %1950, %v367_v24   ;;  %468 = vperm.xlu0 %1949, %v366_v25   ;;  %v404_v25 = vld [vmem:[%s2869_s2 + $0x178] sm:$0xff] }
  0x47   : > { %1830 = vmatmul.msk.bf16.gmra.mxu0 %vm919_vm0, %v1864_v26  ;;  %v403_v26 = vld [vmem:[%s2869_s2 + $0x170] sm:$0xff] }
  0x48   : > { %1838 = vmatmul.msk.bf16.gmra.mxu1 %vm919_vm0, %v1872_v30  ;;  %1846 = vmatmul.msk.bf16.gmra.mxu2 %vm919_vm0, %v1880_v31  ;;  %v1870_v31 = vld [vmem:[%s2868_s1 + $0x38] sm:$0xff] }
  0x49   : > { %493 = vperm.xlu2 %1951, %v371_v27   ;;  %v402_v27 = vld [vmem:[%s2869_s2 + $0x168] sm:$0xff] }
  0x4a   : > { %488 = vperm.xlu1 %1950, %v370_v28   ;;  %483 = vperm.xlu0 %1949, %v369_v29  }
  0x4b   : > { %1854 = vmatmul.msk.bf16.gmra.mxu3 %vm919_vm0, %v1888_v32  ;;  %v407_v32 = vld [vmem:[%s2869_s2 + $0x190] sm:$0xff] }
  0x51   : > { %508 = vperm.xlu2 %1951, %v374_v33   ;;  %v406_v33 = vld [vmem:[%s2869_s2 + $0x188] sm:$0xff] }
  0x52   : > { %503 = vperm.xlu1 %1950, %v373_v34   ;;  %498 = vperm.xlu0 %1949, %v372_v35   ;;  %v405_v34 = vld [vmem:[%s2869_s2 + $0x180] sm:$0xff]  ;;  %v1878_v35 = vld [vmem:[%s2868_s1 + $0x78] sm:$0xff] }
  0x57   : > { %1831 = vmatmul.msk.bf16.gmra.mxu0 %vm919_vm0, %v1865_v36  ;;  %v1886_v36 = vld [vmem:[%s2868_s1 + $0xb8] sm:$0xff] }
  0x58   : > { %1839 = vmatmul.msk.bf16.gmra.mxu1 %vm919_vm0, %v1873_v40  ;;  %1847 = vmatmul.msk.bf16.gmra.mxu2 %vm919_vm0, %v1881_v41  ;;  %v410_v41 = vld [vmem:[%s2869_s2 + $0x1a8] sm:$0xff] }
  0x59   : > { %523 = vperm.xlu2 %1951, %v377_v37   ;;  %v1894_v37 = vld [vmem:[%s2868_s1 + $0xf8] sm:$0xff] }
  0x5a   : > { %518 = vperm.xlu1 %1950, %v376_v38   ;;  %513 = vperm.xlu0 %1949, %v375_v39  }
  0x5b   : > { %1855 = vmatmul.msk.bf16.gmra.mxu3 %vm919_vm0, %v1889_v42  ;;  %v409_v42 = vld [vmem:[%s2869_s2 + $0x1a0] sm:$0xff] }
  0x61   : > { %538 = vperm.xlu2 %1951, %v380_v43   ;;  %v408_v43 = vld [vmem:[%s2869_s2 + $0x198] sm:$0xff] }
  0x62   : > { %533 = vperm.xlu1 %1950, %v379_v44   ;;  %528 = vperm.xlu0 %1949, %v378_v45  }
  0x67   : > { %1832 = vmatmul.msk.bf16.gmra.mxu0 %vm919_vm0, %v1866_v46 }
  0x68   : > { %1840 = vmatmul.msk.bf16.gmra.mxu1 %vm919_vm0, %v1874_v50  ;;  %1848 = vmatmul.msk.bf16.gmra.mxu2 %vm919_vm0, %v1882_v51  ;;  %v412_v50 = vld [vmem:[%s2869_s2 + $0x1b8] sm:$0xff]  ;;  %v411_v51 = vld [vmem:[%s2869_s2 + $0x1b0] sm:$0xff] }
  0x69   : > { %553 = vperm.xlu2 %1951, %v383_v47  }
  0x6a   : > { %548 = vperm.xlu1 %1950, %v382_v48   ;;  %543 = vperm.xlu0 %1949, %v381_v49   ;;  %v413_v49 = vld [vmem:[%s2869_s2 + $0x1c0] sm:$0xff] }
  0x6b   : > { %1856 = vmatmul.msk.bf16.gmra.mxu3 %vm919_vm0, %v1890_v52 }
  0x71   : > { %568 = vperm.xlu2 %1951, %v386_v53  }
  0x72   : > { %563 = vperm.xlu1 %1950, %v385_v54   ;;  %558 = vperm.xlu0 %1949, %v384_v55  }
  0x77   : > { %1833 = vmatmul.msk.bf16.gmra.mxu0 %vm919_vm0, %v1867_v56 }
  0x78   : > { %1841 = vmatmul.msk.bf16.gmra.mxu1 %vm919_vm0, %v1875_v60  ;;  %1849 = vmatmul.msk.bf16.gmra.mxu2 %vm919_vm0, %v1883_v61  ;;  %v415_v61 = vld [vmem:[%s2869_s2 + $0x1d0] sm:$0xff] }
  0x79   : > { %583 = vperm.xlu2 %1951, %v389_v57  }
  0x7a   : > { %578 = vperm.xlu1 %1950, %v388_v58   ;;  %573 = vperm.xlu0 %1949, %v387_v59   ;;  %v416_v59 = vld [vmem:[%s2869_s2 + $0x1d8] sm:$0xff] }
  0x7b   : > { %1857 = vmatmul.msk.bf16.gmra.mxu3 %vm919_vm0, %v1891_v62  ;;  %v414_v62 = vld [vmem:[%s2869_s2 + $0x1c8] sm:$0xff] }
  0x81   : > { %598 = vperm.xlu2 %1951, %v392_v63  }
  0x82   : > { %593 = vperm.xlu1 %1950, %v391_v0   ;;  %588 = vperm.xlu0 %1949, %v390_v1  }
  0x83   : > { %v2298_v2 = vpop.permute.xlu2 %443 }
  0x87   : > { %1834 = vmatmul.msk.bf16.gmra.mxu0 %vm919_vm0, %v1868_v3 }
  0x88   : > { %1842 = vmatmul.msk.bf16.gmra.mxu1 %vm919_vm0, %v1876_v7  ;;  %1850 = vmatmul.msk.bf16.gmra.mxu2 %vm919_vm0, %v1884_v8 }
  0x89   : > { %613 = vperm.xlu2 %1951, %v395_v4  }
  0x8a   : > { %608 = vperm.xlu1 %1950, %v394_v5   ;;  %603 = vperm.xlu0 %1949, %v393_v6  }
  0x8b   : > { %v2324_v10 = vpop.permute.xlu2 %448  ;;  %1858 = vmatmul.msk.bf16.gmra.mxu3 %vm919_vm0, %v1892_v9  ;;  %v419_v9 = vld [vmem:[%s2869_s2 + $0x1f0] sm:$0xff] }
  0x91   : > { %628 = vperm.xlu2 %1951, %v398_v11  }
  0x92   : > { %623 = vperm.xlu1 %1950, %v397_v12   ;;  %618 = vperm.xlu0 %1949, %v396_v13   ;;  %v418_v12 = vld [vmem:[%s2869_s2 + $0x1e8] sm:$0xff]  ;;  %v417_v13 = vld [vmem:[%s2869_s2 + $0x1e0] sm:$0xff] }
  0x93   : > { %v2336_v14 = vpop.permute.xlu2 %463 }
  0x97   : > { %1835 = vmatmul.msk.bf16.gmra.mxu0 %vm919_vm0, %v1869_v15 }
  0x98   : > { %1843 = vmatmul.msk.bf16.gmra.mxu1 %vm919_vm0, %v1877_v19  ;;  %1851 = vmatmul.msk.bf16.gmra.mxu2 %vm919_vm0, %v1885_v20 }
  0x99   : > { %643 = vperm.xlu2 %1951, %v401_v16  }
  0x9a   : > { %638 = vperm.xlu1 %1950, %v400_v17   ;;  %633 = vperm.xlu0 %1949, %v399_v18  }
  0x9b   : > { %v2362_v22 = vpop.permute.xlu2 %478  ;;  %1859 = vmatmul.msk.bf16.gmra.mxu3 %vm919_vm0, %v1893_v21 }
  0x9c   : > { %v2365_v23 = vpop.permute.xlu1 %433  ;;  %v424_v24 = vpop.permute.xlu0 %423 }
  0xa1   : > { %658 = vperm.xlu2 %1951, %v404_v25  }
  0xa2   : > { %653 = vperm.xlu1 %1950, %v403_v26   ;;  %648 = vperm.xlu0 %1949, %v402_v27   ;;  %v1345_v26 = vld [vmem:[%s2870_s3] sm:$0xff]  ;;  %v420_v27 = vld [vmem:[%s2869_s2 + $0x1f8] sm:$0xff] }
  0xa3   : > { %v2376_v28 = vpop.permute.xlu2 %493 }
  0xa4   : > { %2875 = vst [vmem:[#allocation7_spill] sm:$0xff] %v2376_v28  ;;  %v2378_v29 = vpop.permute.xlu1 %438  ;;  %v429_v30 = vpop.permute.xlu0 %428 }
  0xa7   : > { %1836 = vmatmul.msk.bf16.gmra.mxu0 %vm919_vm0, %v1870_v31 }
  0xa8   : > { %1844 = vmatmul.msk.bf16.gmra.mxu1 %vm919_vm0, %v1878_v35  ;;  %1852 = vmatmul.msk.bf16.gmra.mxu2 %vm919_vm0, %v1886_v36 }
  0xa9   : > { %673 = vperm.xlu2 %1951, %v407_v32  }
  0xaa   : > { %668 = vperm.xlu1 %1950, %v406_v33   ;;  %663 = vperm.xlu0 %1949, %v405_v34  }
  0xab   : > { %v509_v38 = vpop.permute.xlu2 %508  ;;  %1860 = vmatmul.msk.bf16.gmra.mxu3 %vm919_vm0, %v1894_v37 }
  0xac   : > { %v2405_v39 = vpop.permute.xlu1 %458  ;;  %v2407_v40 = vpop.permute.xlu0 %453 }
  0xb1   : > { %688 = vperm.xlu2 %1951, %v410_v41   ;;  %v1349_v41 = vld [vmem:[%s2870_s3 + $0x20] sm:$0xff] }
  0xb2   : > { %683 = vperm.xlu1 %1950, %v409_v42   ;;  %678 = vperm.xlu0 %1949, %v408_v43   ;;  %v1348_v43 = vld [vmem:[%s2870_s3 + $0x18] sm:$0xff] }
  0xb3   : > { %v2418_v44 = vpop.permute.xlu2 %523 }
  0xb4   : > { %v2420_v45 = vpop.permute.xlu1 %473  ;;  %v2422_v46 = vpop.permute.xlu0 %468 }
  0xb5   : > { %v1025_v47 = vpop.f32.mrf.mxu0  ;;  %v1065_v52 = vpop.f32.mrf.mxu1 }
  0xb6   : > { %v2424_v48 = vadd.f32 %v1025_v47, %v424_v24  ;;  %v1346_v24 = vld [vmem:[%s2870_s3 + $0x8] sm:$0xff]  ;;  %v1347_v47 = vld [vmem:[%s2870_s3 + $0x10] sm:$0xff] }
  0xb8   : > { %v1185_v32 = vmax.f32 %v2424_v48, 0.0 }
  0xb9   : > { %703 = vperm.xlu2 %1951, %v413_v49  }
  0xba   : > { %698 = vperm.xlu1 %1950, %v412_v50   ;;  %693 = vperm.xlu0 %1949, %v411_v51   ;;  %v1217_v48 = vmin.f32 %v1185_v32, 6.0  ;;  %v1354_v32 = vld [vmem:[%s2870_s3 + $0x48] sm:$0xff] }
  0xbb   : > { %v2435_v53 = vpop.permute.xlu2 %538  ;;  %v1105_v57 = vpop.f32.mrf.mxu2 }
  0xbc   : > { %v2437_v54 = vpop.permute.xlu1 %488  ;;  %v2439_v55 = vpop.permute.xlu0 %483 }
  0xbd   : > { %2876 = vst [vmem:[#allocation8_spill] sm:$0xff] %v2437_v54  ;;  %v1027_v56 = vpop.f32.mrf.mxu0  ;;  %v1067_v63 = vpop.f32.mrf.mxu1 }
  0xbe   : > { %2877 = vst [vmem:[#allocation9_spill] sm:$0xff] %v2439_v55  ;;  %v2441_v58 = vadd.f32 %v1027_v56, %v429_v30  ;;  %v2446_v60 = vpop.f32.mrf.mxu3  ;;  %v2454_v0 = vadd.f32 %v1067_v63, %v509_v38 }
  0xc1   : > { %718 = vperm.xlu2 %1951, %v416_v59  }
  0xc2   : > { %713 = vperm.xlu1 %1950, %v415_v61   ;;  %708 = vperm.xlu0 %1949, %v414_v62  }
  0xc3   : > { %v2456_v1 = vpop.permute.xlu2 %553  ;;  %v2462_v7 = vpop.f32.mrf.mxu2 }
  0xc4   : > { %v504_v3 = vpop.permute.xlu1 %503  ;;  %v2458_v4 = vpop.permute.xlu0 %498 }
  0xc5   : > { %2878 = vst [vmem:[#allocation10_spill] sm:$0xff] %v2458_v4  ;;  %v2460_v5 = vadd.f32 %v1065_v52, %v504_v3  ;;  %v1030_v6 = vpop.f32.mrf.mxu0  ;;  %v1070_v15 = vpop.f32.mrf.mxu1 }
  0xc6   : > { %v2465_v8 = vadd.f32 %v1030_v6, %v2365_v23  ;;  %v2470_v11 = vpop.f32.mrf.mxu3 }
  0xc9   : > { %733 = vperm.xlu2 %1951, %v419_v9  }
  0xca   : > { %728 = vperm.xlu1 %1950, %v418_v12   ;;  %723 = vperm.xlu0 %1949, %v417_v13   ;;  %v1351_v12 = vld [vmem:[%s2870_s3 + $0x30] sm:$0xff]  ;;  %v1350_v13 = vld [vmem:[%s2870_s3 + $0x28] sm:$0xff] }
  0xcb   : > { %v2478_v16 = vpop.permute.xlu2 %568  ;;  %v2482_v21 = vpop.f32.mrf.mxu2 }
  0xcc   : > { %2879 = vst [vmem:[#allocation11_spill] sm:$0xff] %v2478_v16  ;;  %v519_v17 = vpop.permute.xlu1 %518  ;;  %v514_v18 = vpop.permute.xlu0 %513 }
  0xcd   : > { %v2480_v19 = vadd.f32 %v1070_v15, %v514_v18  ;;  %v1032_v20 = vpop.f32.mrf.mxu0  ;;  %v1072_v30 = vpop.f32.mrf.mxu1 }
  0xce   : > { %v1033_v23 = vadd.f32 %v1032_v20, %v2378_v29  ;;  %v2488_v25 = vpop.f32.mrf.mxu3  ;;  %v2496_v31 = vadd.f32 %v1072_v30, %v519_v17  ;;  %v1355_v30 = vld [vmem:[%s2870_s3 + $0x50] sm:$0xff] }
  0xd1   : > { %1384 = vperm.xlu2 %1951, %v1346_v24  }
  0xd2   : > { %1379 = vperm.xlu1 %1950, %v1345_v26   ;;  %738 = vperm.xlu0 %1949, %v420_v27  }
  0xd3   : > { %v584_v29 = vpop.permute.xlu2 %583  ;;  %v1112_v38 = vpop.f32.mrf.mxu2 }
  0xd4   : > { %v1106_v33 = vadd.f32 %v1105_v57, %v584_v29  ;;  %v2499_v34 = vpop.permute.xlu1 %533  ;;  %v2501_v35 = vpop.permute.xlu0 %528  ;;  %v1188_v57 = vmax.f32 %v1033_v23, 0.0 }
  0xd5   : > { %v2503_v36 = vpop.f32.mrf.mxu0  ;;  %v1075_v50 = vpop.f32.mrf.mxu1 }
  0xd6   : > { %v1249_v37 = vmax.f32 %v1106_v33, 0.0  ;;  %v2508_v42 = vpop.f32.mrf.mxu3  ;;  %v2517_v51 = vadd.f32 %v1075_v50, %v2418_v44  ;;  %v1352_v44 = vld [vmem:[%s2870_s3 + $0x38] sm:$0xff]  ;;  %v1220_v15 = vmin.f32 %v1188_v57, 6.0  ;;  %v1353_v33 = vld [vmem:[%s2870_s3 + $0x40] sm:$0xff]  ;;  %v1358_v50 = vld [vmem:[%s2870_s3 + $0x68] sm:$0xff] }
  0xd8   : > { %v1281_v49 = vmin.f32 %v1249_v37, 6.0 }
  0xd9   : > { %1399 = vperm.xlu2 %1951, %v1349_v41  }
  0xda   : > { %1394 = vperm.xlu1 %1950, %v1348_v43   ;;  %1389 = vperm.xlu0 %1949, %v1347_v47   ;;  %v2519_v52 = vadd.f32 %v1281_v49, %v1217_v48 }
  0xdb   : > { %v599_v56 = vpop.permute.xlu2 %598  ;;  %v2525_v3 = vpop.f32.mrf.mxu2 }
  0xdc   : > { %v1113_v59 = vadd.f32 %v1112_v38, %v599_v56  ;;  %v2521_v61 = vpop.permute.xlu1 %548  ;;  %v2523_v62 = vpop.permute.xlu0 %543 }
  0xdd   : > { %v2527_v6 = vpop.f32.mrf.mxu0  ;;  %v2540_v18 = vpop.f32.mrf.mxu1 }
  0xde   : > { %v1252_v63 = vmax.f32 %v1113_v59, 0.0  ;;  %v2532_v9 = vpop.f32.mrf.mxu3 }
  0xe0   : > { %v1284_v17 = vmin.f32 %v1252_v63, 6.0  ;;  %v1357_v63 = vld [vmem:[%s2870_s3 + $0x60] sm:$0xff] }
  0xe1   : > { %1414 = vperm.xlu2 %1951, %v1352_v44  }
  0xe2   : > { %1409 = vperm.xlu1 %1950, %v1351_v12   ;;  %1404 = vperm.xlu0 %1949, %v1350_v13   ;;  %v2542_v20 = vadd.f32 %v1284_v17, %v1220_v15 }
  0xe3   : > { %v614_v23 = vpop.permute.xlu2 %613  ;;  %v2548_v27 = vpop.f32.mrf.mxu2 }
  0xe4   : > { %v2544_v24 = vpop.permute.xlu1 %563  ;;  %v2546_v26 = vpop.permute.xlu0 %558 }
  0xe5   : > { %v1040_v37 = vpop.f32.mrf.mxu0  ;;  %v2561_v38 = vpop.f32.mrf.mxu1 }
  0xe6   : > { %v2553_v29 = vpop.f32.mrf.mxu3  ;;  %v1041_v41 = vadd.f32 %v1040_v37, %v2407_v40  ;;  %v1356_v40 = vld [vmem:[%s2870_s3 + $0x58] sm:$0xff] }
  0xe8   : > { %v1191_v56 = vmax.f32 %v1041_v41, 0.0 }
  0xe9   : > { %1429 = vperm.xlu2 %1951, %v1355_v30  }
  0xea   : > { %1424 = vperm.xlu1 %1950, %v1354_v32   ;;  %1419 = vperm.xlu0 %1949, %v1353_v33   ;;  %v1223_v13 = vmin.f32 %v1191_v56, 6.0  ;;  %v1187_v33 = vmax.f32 %v2465_v8, 0.0  ;;  %v1359_v8 = vld [vmem:[%s2870_s3 + $0x70] sm:$0xff] }
  0xeb   : > { %v2564_v43 = vpop.permute.xlu2 %628  ;;  %v1120_v49 = vpop.f32.mrf.mxu2 }
  0xec   : > { %v2566_v47 = vpop.permute.xlu1 %578  ;;  %v2568_v48 = vpop.permute.xlu0 %573  ;;  %v1121_v57 = vadd.f32 %v1120_v49, %v614_v23  ;;  %v1186_v23 = vmax.f32 %v2441_v58, 0.0  ;;  %v1360_v58 = vld [vmem:[%s2870_s3 + $0x78] sm:$0xff] }
  0xed   : > { %v2581_v44 = vpop.f32.mrf.mxu1  ;;  %v1042_v4 = vpop.f32.mrf.mxu0 }
  0xee   : > { %v2573_v59 = vpop.f32.mrf.mxu3  ;;  %v1255_v12 = vmax.f32 %v1121_v57, 0.0 }
  0xf0   : > { %v1287_v15 = vmin.f32 %v1255_v12, 6.0  ;;  %v1036_v12 = vadd.f32 %v2503_v36, %v2298_v2  ;;  %v1364_v2 = vld [vmem:[%s2870_s3 + $0x98] sm:$0xff] }
  0xf1   : > { %1444 = vperm.xlu2 %1951, %v1358_v50   ;;  %v1361_v50 = vld [vmem:[%s2870_s3 + $0x80] sm:$0xff] }
  0xf2   : > { %1439 = vperm.xlu1 %1950, %v1357_v63   ;;  %1434 = vperm.xlu0 %1949, %v1356_v40   ;;  %v2589_v49 = vadd.f32 %v1287_v15, %v1223_v13  ;;  %v1219_v40 = vmin.f32 %v1187_v33, 6.0  ;;  %v1189_v16 = vmax.f32 %v1036_v12, 0.0 }
  0xf3   : > { %v2583_v17 = vpop.permute.xlu2 %643 }
  0xf4   : > { %v594_v30 = vpop.permute.xlu1 %593  ;;  %v589_v32 = vpop.permute.xlu0 %588 }
  0xf5   : > { %v1111_v37 = vadd.f32 %v2482_v21, %v594_v30  ;;  %v1108_v41 = vadd.f32 %v2462_v7, %v589_v32  ;;  %v1218_v21 = vmin.f32 %v1186_v23, 6.0  ;;  %v2602_v7 = vpop.f32.mrf.mxu1 }
  0xf6   : > { %v2594_v63 = vpop.f32.mrf.mxu3 }
  0xf7   : > { %v1251_v56 = vmax.f32 %v1111_v37, 0.0  ;;  %v1250_v57 = vmax.f32 %v1108_v41, 0.0 }
  0xf9   : > { %v1283_v13 = vmin.f32 %v1251_v56, 6.0  ;;  %v1282_v15 = vmin.f32 %v1250_v57, 6.0  ;;  %1459 = vperm.xlu2 %1951, %v1361_v50   ;;  %v1363_v56 = vld [vmem:[%s2870_s3 + $0x90] sm:$0xff]  ;;  %v1362_v57 = vld [vmem:[%s2870_s3 + $0x88] sm:$0xff] }
  0xfa   : > { %1454 = vperm.xlu1 %1950, %v1360_v58   ;;  %1449 = vperm.xlu0 %1949, %v1359_v8   ;;  %v1221_v8 = vmin.f32 %v1189_v16, 6.0 }
  0xfb   : > { %v2606_v30 = vpop.permute.xlu2 %658  ;;  %v2608_v32 = vadd.f32 %v1282_v15, %v1218_v21  ;;  %v2610_v37 = vadd.f32 %v1283_v13, %v1219_v40  ;;  %v1122_v40 = vpop.f32.mrf.mxu2  ;;  %v1203_v15 = vmax.f32 %v2480_v19, 0.0  ;;  %v1365_v19 = vld [vmem:[%s2870_s3 + $0xa0] sm:$0xff] }
  0xfc   : > { %2880 = vst [vmem:[#allocation12_spill] sm:$0xff] %v2606_v30  ;;  %v2612_v41 = vpop.permute.xlu1 %608  ;;  %v604_v23 = vpop.permute.xlu0 %603 }
  0xfd   : > { %v1116_v33 = vadd.f32 %v2525_v3, %v604_v23  ;;  %v2624_v58 = vpop.f32.mrf.mxu1  ;;  %v1043_v3 = vadd.f32 %v1042_v4, %v2405_v39  ;;  %v1367_v39 = vld [vmem:[%s2870_s3 + $0xb0] sm:$0xff] }
  0xfe   : > { %v1165_v50 = vpop.f32.mrf.mxu3 }
  0xff   : > { %v1253_v36 = vmax.f32 %v1116_v33, 0.0  ;;  %v1192_v28 = vmax.f32 %v1043_v3, 0.0 }
 0x101   : > { %v1285_v21 = vmin.f32 %v1253_v36, 6.0  ;;  %1474 = vperm.xlu2 %1951, %v1364_v2   ;;  %v1366_v36 = vld [vmem:[%s2870_s3 + $0xa8] sm:$0xff] }
 0x102   : > { %1469 = vperm.xlu1 %1950, %v1363_v56   ;;  %1464 = vperm.xlu0 %1949, %v1362_v57  }
 0x103   : > { %v674_v12 = vpop.permute.xlu2 %673  ;;  %v2627_v13 = vadd.f32 %v1285_v21, %v1221_v8  ;;  %v1224_v8 = vmin.f32 %v1192_v28, 6.0  ;;  %v1370_v28 = vld [vmem:[%s2870_s3 + $0xc8] sm:$0xff] }
 0x104   : > { %v1151_v23 = vadd.f32 %v2488_v25, %v674_v12  ;;  %v2631_v33 = vpop.permute.xlu1 %623  ;;  %v619_v30 = vpop.permute.xlu0 %618  ;;  %v1235_v25 = vmin.f32 %v1203_v15, 6.0 }
 0x105   : > { %v1123_v54 = vadd.f32 %v1122_v40, %v619_v30  ;;  %v1078_v30 = vadd.f32 %v2540_v18, %v2501_v35  ;;  %v2646_v57 = vpop.f32.mrf.mxu1 }
 0x106   : > { %v1267_v16 = vmax.f32 %v1151_v23, 0.0  ;;  %v2636_v2 = vpop.f32.mrf.mxu3 }
 0x107   : > { %v1256_v4 = vmax.f32 %v1123_v54, 0.0  ;;  %v1206_v12 = vmax.f32 %v1078_v30, 0.0 }
 0x108   : > { %v1299_v56 = vmin.f32 %v1267_v16, 6.0  ;;  %v1369_v16 = vld [vmem:[%s2870_s3 + $0xc0] sm:$0xff] }
 0x109   : > { %v1288_v3 = vmin.f32 %v1256_v4, 6.0  ;;  %1489 = vperm.xlu2 %1951, %v1367_v39   ;;  %v1368_v39 = vld [vmem:[%s2870_s3 + $0xb8] sm:$0xff]  ;;  %v1086_v4 = vadd.f32 %v2602_v7, %v2523_v62  ;;  %v2679_v62 = vpop.f32.mrf.mxu2 }
 0x10a   : > { %1484 = vperm.xlu1 %1950, %v1366_v36   ;;  %1479 = vperm.xlu0 %1949, %v1365_v19   ;;  %v2648_v54 = vadd.f32 %v1299_v56, %v1235_v25 }
 0x10b   : > { %v689_v21 = vpop.permute.xlu2 %688  ;;  %v2650_v40 = vadd.f32 %v1288_v3, %v1224_v8  ;;  %v1209_v56 = vmax.f32 %v1086_v4, 0.0  ;;  %v2690_v4 = vpop.f32.mrf.mxu0 }
 0x10c   : > { %2881 = vst [vmem:[#allocation13_spill] sm:$0xff] %v2648_v54  ;;  %v1158_v23 = vadd.f32 %v2553_v29, %v689_v21  ;;  %v2653_v15 = vpop.permute.xlu1 %638  ;;  %v2655_v55 = vpop.permute.xlu0 %633  ;;  %v1238_v29 = vmin.f32 %v1206_v12, 6.0  ;;  %v1373_v12 = vld [vmem:[%s2870_s3 + $0xe0] sm:$0xff] }
 0x10d   : > { %v1092_v19 = vpop.f32.mrf.mxu1 }
 0x10e   : > { %v1270_v35 = vmax.f32 %v1158_v23, 0.0  ;;  %v2660_v18 = vpop.f32.mrf.mxu3 }
 0x110   : > { %v1302_v36 = vmin.f32 %v1270_v35, 6.0  ;;  %v1372_v35 = vld [vmem:[%s2870_s3 + $0xd8] sm:$0xff] }
 0x111   : > { %1504 = vperm.xlu2 %1951, %v1370_v28   ;;  %v1241_v28 = vmin.f32 %v1209_v56, 6.0  ;;  %v1201_v56 = vmax.f32 %v2460_v5, 0.0 }
 0x112   : > { %1499 = vperm.xlu1 %1950, %v1369_v16   ;;  %1494 = vperm.xlu0 %1949, %v1368_v39   ;;  %v2670_v25 = vadd.f32 %v1302_v36, %v1238_v29  ;;  %v1093_v16 = vadd.f32 %v1092_v19, %v2546_v26 }
 0x113   : > { %v704_v30 = vpop.permute.xlu2 %703 }
 0x114   : > { %2882 = vst [vmem:[#allocation14_spill] sm:$0xff] %v2670_v25  ;;  %v1166_v8 = vadd.f32 %v1165_v50, %v704_v30  ;;  %v2672_v3 = vpop.permute.xlu1 %653  ;;  %v2674_v21 = vpop.permute.xlu0 %648  ;;  %v1371_v50 = vld [vmem:[%s2870_s3 + $0xd0] sm:$0xff] }
 0x115   : > { %2883 = vst [vmem:[#allocation15_spill] sm:$0xff] %v2672_v3  ;;  %v2688_v29 = vpop.f32.mrf.mxu1 }
 0x116   : > { %2884 = vst [vmem:[#allocation16_spill] sm:$0xff] %v2674_v21  ;;  %v1273_v23 = vmax.f32 %v1166_v8, 0.0  ;;  %v1172_v7 = vpop.f32.mrf.mxu3  ;;  %v1212_v8 = vmax.f32 %v1093_v16, 0.0  ;;  %v1202_v21 = vmax.f32 %v2454_v0, 0.0  ;;  %v1374_v0 = vld [vmem:[%s2870_s3 + $0xe8] sm:$0xff] }
 0x118   : > { %v1305_v39 = vmin.f32 %v1273_v23, 6.0  ;;  %v1244_v5 = vmin.f32 %v1212_v8, 6.0  ;;  %v1204_v8 = vmax.f32 %v2496_v31, 0.0  ;;  %v1083_v31 = vadd.f32 %v2581_v44, %v2435_v53 }
 0x119   : > { %1519 = vperm.xlu2 %1951, %v1373_v12   ;;  %v1376_v12 = vld [vmem:[%s2870_s3 + $0xf8] sm:$0xff] }
 0x11a   : > { %1514 = vperm.xlu1 %1950, %v1372_v35   ;;  %1509 = vperm.xlu0 %1949, %v1371_v50   ;;  %v2692_v36 = vadd.f32 %v1305_v39, %v1241_v28 }
 0x11b   : > { %v719_v30 = vpop.permute.xlu2 %718 }
 0x11c   : > { %2885 = vst [vmem:[#allocation17_spill] sm:$0xff] %v2692_v36  ;;  %v1173_v25 = vadd.f32 %v1172_v7, %v719_v30  ;;  %v669_v54 = vpop.permute.xlu1 %668  ;;  %v664_v3 = vpop.permute.xlu0 %663  ;;  %v1375_v7 = vld [vmem:[%s2870_s3 + $0xf0] sm:$0xff] }
 0x11d   : > { %v1148_v26 = vadd.f32 %v2470_v11, %v669_v54  ;;  %v1146_v19 = vadd.f32 %v2446_v60, %v664_v3  ;;  %v2709_v60 = vpop.f32.mrf.mxu1  ;;  %v1234_v54 = vmin.f32 %v1202_v21, 6.0  ;;  %v2711_v3 = vpop.f32.mrf.mxu2 }
 0x11e   : > { %v1276_v23 = vmax.f32 %v1173_v25, 0.0  ;;  %v2701_v28 = vpop.f32.mrf.mxu3  ;;  %2886 = vst [vmem:[#allocation18_spill] sm:$0xff] %v2709_v60  ;;  %v1233_v25 = vmin.f32 %v1201_v56, 6.0  ;;  %v1205_v56 = vmax.f32 %v2517_v51, 0.0 }
 0x11f   : > { %v1266_v35 = vmax.f32 %v1148_v26, 0.0  ;;  %v1265_v50 = vmax.f32 %v1146_v19, 0.0  ;;  %v2715_v26 = vpop.f32.mrf.mxu0 }
 0x120   : > { %v1308_v11 = vmin.f32 %v1276_v23, 6.0 }
 0x121   : > { %v1298_v16 = vmin.f32 %v1266_v35, 6.0  ;;  %v1297_v39 = vmin.f32 %v1265_v50, 6.0  ;;  %1534 = vperm.xlu2 %1951, %v1376_v12  }
 0x122   : > { %1529 = vperm.xlu1 %1950, %v1375_v7   ;;  %1524 = vperm.xlu0 %1949, %v1374_v0   ;;  %v2713_v30 = vadd.f32 %v1308_v11, %v1244_v5  ;;  %v1236_v11 = vmin.f32 %v1204_v8, 6.0 }
 0x123   : > { %v2717_v19 = vadd.f32 %v1297_v39, %v1233_v25  ;;  %v2719_v36 = vadd.f32 %v1298_v16, %v1234_v54  ;;  %v734_v50 = vpop.permute.xlu2 %733  ;;  %v1081_v54 = vadd.f32 %v2561_v38, %v2499_v34  ;;  %v1237_v25 = vmin.f32 %v1205_v56, 6.0 }
 0x124   : > { %2887 = vst [vmem:[#allocation19_spill] sm:$0xff] %v2713_v30  ;;  %v684_v23 = vpop.permute.xlu1 %683  ;;  %v679_v21 = vpop.permute.xlu0 %678 }
 0x125   : > { %v1156_v35 = vadd.f32 %v2532_v9, %v684_v23  ;;  %v1153_v12 = vadd.f32 %v2508_v42, %v679_v21  ;;  %v1100_v51 = vpop.f32.mrf.mxu1  ;;  %v2731_v30 = vpop.f32.mrf.mxu2  ;;  %v1207_v23 = vmax.f32 %v1081_v54, 0.0 }
 0x126   : > { %v2725_v5 = vpop.f32.mrf.mxu3  ;;  %v1101_v21 = vadd.f32 %v1100_v51, %v2568_v48  ;;  %v1091_v48 = vadd.f32 %v2646_v57, %v2456_v1 }
 0x127   : > { %v1269_v7 = vmax.f32 %v1156_v35, 0.0  ;;  %v1268_v0 = vmax.f32 %v1153_v12, 0.0  ;;  %v1208_v12 = vmax.f32 %v1083_v31, 0.0  ;;  %v2738_v34 = vpop.f32.mrf.mxu0 }
 0x129   : > { %v1301_v16 = vmin.f32 %v1269_v7, 6.0  ;;  %v1300_v39 = vmin.f32 %v1268_v0, 6.0  ;;  %v1239_v0 = vmin.f32 %v1207_v23, 6.0 }
 0x12b   : > { %v2733_v9 = vadd.f32 %v1300_v39, %v1236_v11  ;;  %v2735_v42 = vadd.f32 %v1301_v16, %v1237_v25  ;;  %v1088_v11 = vadd.f32 %v2624_v58, %v2521_v61  ;;  %v1215_v25 = vmax.f32 %v1101_v21, 0.0  ;;  %v1385_v31 = vpop.permute.xlu2 %1384 }
 0x12c   : > { %v699_v8 = vpop.permute.xlu1 %698  ;;  %v694_v35 = vpop.permute.xlu0 %693  ;;  %v1240_v16 = vmin.f32 %v1208_v12, 6.0  ;;  %v1211_v61 = vmax.f32 %v1091_v48, 0.0 }
 0x12d   : > { %v1163_v38 = vadd.f32 %v2594_v63, %v699_v8  ;;  %v1161_v53 = vadd.f32 %v2573_v59, %v694_v35  ;;  %v1210_v8 = vmax.f32 %v1088_v11, 0.0  ;;  %v1247_v35 = vmin.f32 %v1215_v25, 6.0  ;;  %v2750_v58 = vpop.f32.mrf.mxu2 }
 0x12e   : > { %v1180_v7 = vpop.f32.mrf.mxu3 }
 0x12f   : > { %v1272_v44 = vmax.f32 %v1163_v38, 0.0  ;;  %v1271_v56 = vmax.f32 %v1161_v53, 0.0  ;;  %v1181_v54 = vadd.f32 %v1180_v7, %v734_v50  ;;  %v2756_v21 = vpop.f32.mrf.mxu0  ;;  %v1243_v7 = vmin.f32 %v1211_v61, 6.0 }
 0x131   : > { %v1304_v39 = vmin.f32 %v1272_v44, 6.0  ;;  %v1303_v51 = vmin.f32 %v1271_v56, 6.0  ;;  %v1279_v60 = vmax.f32 %v1181_v54, 0.0  ;;  %v1242_v56 = vmin.f32 %v1210_v8, 6.0 }
 0x133   : > { %v2746_v63 = vadd.f32 %v1303_v51, %v1239_v0  ;;  %v2748_v59 = vadd.f32 %v1304_v39, %v1240_v16  ;;  %v1311_v23 = vmin.f32 %v1279_v60, 6.0  ;;  %v1096_v60 = vadd.f32 %v2688_v29, %v2544_v24  ;;  %v1400_v25 = vpop.permute.xlu2 %1399  ;;  %v1102_v51 = vpop.f32.mrf.mxu1 }
 0x134   : > { %v714_v38 = vpop.permute.xlu1 %713  ;;  %v709_v53 = vpop.permute.xlu0 %708  ;;  %v1103_v24 = vadd.f32 %v1102_v51, %v2566_v47  ;;  %v1038_v47 = vadd.f32 %v2527_v6, %v2324_v10 }
 0x135   : > { %v1171_v50 = vadd.f32 %v2660_v18, %v714_v38  ;;  %v1168_v1 = vadd.f32 %v2636_v2, %v709_v53  ;;  %v2754_v57 = vadd.f32 %v1311_v23, %v1247_v35  ;;  %v1213_v48 = vmax.f32 %v1096_v60, 0.0  ;;  %v1135_v35 = vpop.f32.mrf.mxu2 }
 0x136   : > { %v1182_v53 = vpop.f32.mrf.mxu3  ;;  %v1118_v60 = vadd.f32 %v2548_v27, %v2612_v41  ;;  %v1126_v27 = vadd.f32 %v2679_v62, %v2631_v33  ;;  %v1131_v33 = vadd.f32 %v2731_v30, %v2655_v55 }
 0x137   : > { %v1275_v12 = vmax.f32 %v1171_v50, 0.0  ;;  %v1274_v44 = vmax.f32 %v1168_v1, 0.0  ;;  %v2767_v23 = vpop.f32.mrf.mxu0  ;;  %v1245_v38 = vmin.f32 %v1213_v48, 6.0 }
 0x138   : > { %v1254_v51 = vmax.f32 %v1118_v60, 0.0  ;;  %v1257_v62 = vmax.f32 %v1126_v27, 0.0  ;;  %v1051_v60 = vadd.f32 %v2738_v34, %v2420_v45  ;;  %v1136_v45 = vadd.f32 %v1135_v35, %v2583_v17  ;;  %v2890_v17 = vld [vmem:[#allocation8_spill] sm:$0xff] }
 0x139   : > { %v1307_v0 = vmin.f32 %v1275_v12, 6.0  ;;  %v1306_v11 = vmin.f32 %v1274_v44, 6.0  ;;  %v1538_v12 = vmul.f32 %v1385_v31, %v2608_v32  ;;  %v1216_v44 = vmax.f32 %v1103_v24, 0.0 }
 0x13a   : > { %v1190_v32 = vmax.f32 %v1038_v47, 0.0  ;;  %v1289_v47 = vmin.f32 %v1257_v62, 6.0  ;;  %v2891_v62 = vld [vmem:[#allocation15_spill] sm:$0xff] }
 0x13b   : > { %v2760_v54 = vadd.f32 %v1306_v11, %v1242_v56  ;;  %v2762_v16 = vadd.f32 %v1307_v0, %v1243_v7  ;;  %v1415_v56 = vpop.permute.xlu2 %1414  ;;  %v1248_v48 = vmin.f32 %v1216_v44, 6.0 }
 0x13c   : > { %v2764_v18 = vpop.permute.xlu1 %728  ;;  %v724_v2 = vpop.permute.xlu0 %723 }
 0x13d   : > { %v1176_v39 = vadd.f32 %v2701_v28, %v724_v2  ;;  %v1137_v2 = vpop.f32.mrf.mxu2 }
 0x13f   : > { %v1277_v8 = vmax.f32 %v1176_v39, 0.0 }
 0x141   : > { %v1309_v29 = vmin.f32 %v1277_v8, 6.0  ;;  %v1057_v8 = vpop.f32.mrf.mxu0 }
 0x142   : > { %v1058_v35 = vadd.f32 %v1057_v8, %v2890_v17  ;;  %v2893_v8 = vld [vmem:[#allocation12_spill] sm:$0xff] }
 0x143   : > { %v2770_v61 = vadd.f32 %v1309_v29, %v1245_v38  ;;  %v1286_v29 = vmin.f32 %v1254_v51, 6.0  ;;  %v2783_v41 = vpop.permute.xlu2 %1429  ;;  %v1544_v51 = vmul.f32 %v1415_v56, %v2650_v40 }
 0x144   : > { %v1380_v50 = vpop.permute.xlu1 %1379  ;;  %v739_v1 = vpop.permute.xlu0 %738 }
 0x145   : > { %v1537_v28 = vmul.f32 %v1380_v50, %v2519_v52  ;;  %v1183_v7 = vadd.f32 %v1182_v53, %v739_v1  ;;  %v1222_v53 = vmin.f32 %v1190_v32, 6.0  ;;  %v1046_v50 = vadd.f32 %v2690_v4, %v2336_v14 }
 0x146   : > { %v1128_v1 = vadd.f32 %v2711_v3, %v2564_v43 }
 0x147   : > { %v1569_v0 = vadd.f32 %v1538_v12, %v1537_v28  ;;  %v1280_v11 = vmax.f32 %v1183_v7, 0.0  ;;  %v1541_v12 = vmul.f32 %v1400_v25, %v2627_v13  ;;  %v1140_v28 = vpop.f32.mrf.mxu2  ;;  %v1259_v25 = vmax.f32 %v1131_v33, 0.0 }
 0x148   : > { %v1258_v43 = vmax.f32 %v1128_v1, 0.0 }
 0x149   : > { %v1312_v39 = vmin.f32 %v1280_v11, 6.0  ;;  %v1060_v11 = vpop.f32.mrf.mxu0 }
 0x14b   : > { %v2778_v38 = vadd.f32 %v1312_v39, %v1248_v48  ;;  %v1053_v48 = vadd.f32 %v2756_v21, %v2362_v22  ;;  %v1290_v39 = vmin.f32 %v1258_v43, 6.0  ;;  %v1445_v32 = vpop.permute.xlu2 %1444  ;;  %v1261_v21 = vmax.f32 %v1136_v45, 0.0  ;;  %v2892_v43 = vld [vmem:[#allocation7_spill] sm:$0xff] }
 0x14c   : > { %v1395_v31 = vpop.permute.xlu1 %1394  ;;  %v1390_v24 = vpop.permute.xlu0 %1389 }
 0x14d   : > { %v1539_v52 = vmul.f32 %v1390_v24, %v2610_v37  ;;  %v1540_v10 = vmul.f32 %v1395_v31, %v2542_v20  ;;  %v1048_v37 = vadd.f32 %v2715_v26, %v2422_v46  ;;  %v1318_v20 = vadd.f32 %v1286_v29, %v1222_v53 }
 0x14e   : > { %v1133_v46 = vadd.f32 %v2750_v58, %v2653_v15  ;;  %v1195_v26 = vmax.f32 %v1051_v60, 0.0  ;;  %v1291_v24 = vmin.f32 %v1259_v25, 6.0  ;;  %v2889_v15 = vld [vmem:[#allocation16_spill] sm:$0xff]  ;;  %v1196_v22 = vmax.f32 %v1053_v48, 0.0 }
 0x14f   : > { %v1570_v6 = vadd.f32 %v1569_v0, %v1539_v52  ;;  %v1193_v0 = vmax.f32 %v1046_v50, 0.0  ;;  %v1194_v13 = vmax.f32 %v1048_v37, 0.0  ;;  %v2888_v52 = vld [vmem:[#allocation9_spill] sm:$0xff]  ;;  %v1138_v58 = vadd.f32 %v1137_v2, %v2889_v15  ;;  %v1142_v37 = vpop.f32.mrf.mxu2 }
 0x150   : > { %v1056_v29 = vadd.f32 %v2767_v23, %v2888_v52  ;;  %v1260_v27 = vmax.f32 %v1133_v46, 0.0  ;;  %v1227_v53 = vmin.f32 %v1195_v26, 6.0  ;;  %v1141_v2 = vadd.f32 %v1140_v28, %v2891_v62  ;;  %v2894_v26 = vld [vmem:[#allocation10_spill] sm:$0xff] }
 0x151   : > { %v1571_v44 = vadd.f32 %v1570_v6, %v1540_v10  ;;  %v1225_v34 = vmin.f32 %v1193_v0, 6.0  ;;  %v1228_v60 = vmin.f32 %v1196_v22, 6.0  ;;  %v1062_v0 = vpop.f32.mrf.mxu0 }
 0x152   : > { %v1323_v33 = vadd.f32 %v1291_v24, %v1227_v53  ;;  %v1292_v23 = vmin.f32 %v1260_v27, 6.0  ;;  %v1063_v48 = vadd.f32 %v1062_v0, %v2894_v26 }
 0x153   : > { %v1572_v7 = vadd.f32 %v1571_v44, %v1541_v12  ;;  %v1321_v10 = vadd.f32 %v1289_v47, %v1225_v34  ;;  %v1197_v12 = vmax.f32 %v1056_v29, 0.0  ;;  %v1262_v44 = vmax.f32 %v1138_v58, 0.0  ;;  %v1460_v45 = vpop.permute.xlu2 %1459 }
 0x154   : > { %v1410_v14 = vpop.permute.xlu1 %1409  ;;  %v1405_v4 = vpop.permute.xlu0 %1404  ;;  %v1547_v25 = vmul.f32 %v2783_v41, %v1323_v33  ;;  %v1324_v28 = vadd.f32 %v1292_v23, %v1228_v60  ;;  %v1553_v33 = vmul.f32 %v1460_v45, %v2717_v19  ;;  %v2895_v60 = vld [vmem:[#allocation13_spill] sm:$0xff] }
 0x155   : > { %v1542_v3 = vmul.f32 %v1405_v4, %v1318_v20  ;;  %v1543_v55 = vmul.f32 %v1410_v14, %v2589_v49  ;;  %v1226_v49 = vmin.f32 %v1194_v13, 6.0  ;;  %v1293_v14 = vmin.f32 %v1261_v21, 6.0 }
 0x156   : > { %v1198_v4 = vmax.f32 %v1058_v35, 0.0  ;;  %v1143_v13 = vadd.f32 %v1142_v37, %v2893_v8  ;;  %v1229_v46 = vmin.f32 %v1197_v12, 6.0 }
 0x157   : > { %v1573_v30 = vadd.f32 %v1572_v7, %v1542_v3  ;;  %v1322_v40 = vadd.f32 %v1290_v39, %v1226_v49  ;;  %v1061_v3 = vadd.f32 %v1060_v11, %v2892_v43  ;;  %v1200_v49 = vmax.f32 %v1063_v48, 0.0 }
 0x158   : > { %v1230_v39 = vmin.f32 %v1198_v4, 6.0  ;;  %v1264_v52 = vmax.f32 %v1143_v13, 0.0  ;;  %v1325_v29 = vadd.f32 %v1293_v14, %v1229_v46 }
 0x159   : > { %v1574_v31 = vadd.f32 %v1573_v30, %v1543_v55  ;;  %v1294_v55 = vmin.f32 %v1262_v44, 6.0  ;;  %v1263_v30 = vmax.f32 %v1141_v2, 0.0  ;;  %v1199_v24 = vmax.f32 %v1061_v3, 0.0 }
 0x15a   : > { %v1232_v21 = vmin.f32 %v1200_v49, 6.0 }
 0x15b   : > { %v1575_v6 = vadd.f32 %v1574_v31, %v1544_v51  ;;  %v1326_v15 = vadd.f32 %v1294_v55, %v1230_v39  ;;  %v1295_v58 = vmin.f32 %v1263_v30, 6.0 }
 0x15c   : > { %v1425_v50 = vpop.permute.xlu1 %1424  ;;  %v1420_v1 = vpop.permute.xlu0 %1419 }
 0x15d   : > { %v1545_v56 = vmul.f32 %v1420_v1, %v1321_v10  ;;  %v1546_v20 = vmul.f32 %v1425_v50, %v1322_v40  ;;  %v1231_v10 = vmin.f32 %v1199_v24, 6.0  ;;  %v1550_v53 = vmul.f32 %v1445_v32, %v1326_v15  ;;  %v1475_v40 = vpop.permute.xlu2 %1474 }
 0x15e   : > { %v1556_v0 = vmul.f32 %v1475_v40, %v2733_v9  ;;  %v1178_v9 = vadd.f32 %v2725_v5, %v2764_v18 }
 0x15f   : > { %v1576_v7 = vadd.f32 %v1575_v6, %v1545_v56  ;;  %v1296_v6 = vmin.f32 %v1264_v52, 6.0  ;;  %v1327_v17 = vadd.f32 %v1295_v58, %v1231_v10  ;;  %v2900_v10 = vld [vmem:[#allocation19_spill] sm:$0xff] }
 0x161   : > { %v1577_v47 = vadd.f32 %v1576_v7, %v1546_v20  ;;  %v1328_v56 = vadd.f32 %v1296_v6, %v1232_v21 }
 0x163   : > { %v1578_v34 = vadd.f32 %v1577_v47, %v1547_v25  ;;  %v2896_v47 = vld [vmem:[#allocation14_spill] sm:$0xff] }
 0x164   : > { %v1440_v51 = vpop.permute.xlu1 %1439  ;;  %v1435_v31 = vpop.permute.xlu0 %1434 }
 0x165   : > { %v1548_v11 = vmul.f32 %v1435_v31, %v1324_v28  ;;  %v1549_v41 = vmul.f32 %v1440_v51, %v1325_v29  ;;  %v1490_v32 = vpop.permute.xlu2 %1489  ;;  %v2898_v31 = vld [vmem:[#allocation11_spill] sm:$0xff] }
 0x166   : > { %v1559_v55 = vmul.f32 %v1490_v32, %v2746_v63  ;;  %v1278_v63 = vmax.f32 %v1178_v9, 0.0 }
 0x167   : > { %v1579_v27 = vadd.f32 %v1578_v34, %v1548_v11  ;;  %v2897_v34 = vld [vmem:[#allocation17_spill] sm:$0xff] }
 0x169   : > { %v1580_v22 = vadd.f32 %v1579_v27, %v1549_v41  ;;  %v1310_v27 = vmin.f32 %v1278_v63, 6.0 }
 0x16b   : > { %v1581_v35 = vadd.f32 %v1580_v22, %v1550_v53 }
 0x16c   : > { %v1455_v50 = vpop.permute.xlu1 %1454  ;;  %v1450_v1 = vpop.permute.xlu0 %1449 }
 0x16d   : > { %v1551_v12 = vmul.f32 %v1450_v1, %v1327_v17  ;;  %v1552_v44 = vmul.f32 %v1455_v50, %v1328_v56  ;;  %v1505_v30 = vpop.permute.xlu2 %1504 }
 0x16e   : > { %v1562_v52 = vmul.f32 %v1505_v30, %v2760_v54 }
 0x16f   : > { %v1582_v37 = vadd.f32 %v1581_v35, %v1551_v12 }
 0x171   : > { %v1583_v23 = vadd.f32 %v1582_v37, %v1552_v44 }
 0x173   : > { %v1584_v62 = vadd.f32 %v1583_v23, %v1553_v33 }
 0x174   : > { %v1470_v2 = vpop.permute.xlu1 %1469  ;;  %v1465_v20 = vpop.permute.xlu0 %1464 }
 0x175   : > { %v1554_v7 = vmul.f32 %v1465_v20, %v2719_v36  ;;  %v1555_v14 = vmul.f32 %v1470_v2, %v2895_v60  ;;  %v1520_v11 = vpop.permute.xlu2 %1519  ;;  %v1607_v2 = vstv %s1606_s15 }
 0x176   : > { %v1565_v53 = vmul.f32 %v1520_v11, %v2770_v61 }
 0x177   : > { %v1585_v4 = vadd.f32 %v1584_v62, %v1554_v7 }
 0x179   : > { %v1586_v43 = vadd.f32 %v1585_v4, %v1555_v14 }
 0x17b   : > { %v1587_v3 = vadd.f32 %v1586_v43, %v1556_v0 }
 0x17c   : > { %v1485_v8 = vpop.permute.xlu1 %1484  ;;  %v1480_v13 = vpop.permute.xlu0 %1479 }
 0x17d   : > { %v1557_v25 = vmul.f32 %v1480_v13, %v2735_v42  ;;  %v1558_v19 = vmul.f32 %v1485_v8, %v2896_v47  ;;  %v2899_v42 = vld [vmem:[#allocation18_spill] sm:$0xff]  ;;  %v1535_v1 = vpop.permute.xlu2 %1534 }
 0x17e   : > { %v1098_v24 = vadd.f32 %v2899_v42, %v2898_v31 }
 0x17f   : > { %v1588_v46 = vadd.f32 %v1587_v3, %v1557_v25 }
 0x180   : > { %v1214_v41 = vmax.f32 %v1098_v24, 0.0 }
 0x181   : > { %v1589_v26 = vadd.f32 %v1588_v46, %v1558_v19 }
 0x182   : > { %v1246_v6 = vmin.f32 %v1214_v41, 6.0 }
 0x183   : > { %v1590_v36 = vadd.f32 %v1589_v26, %v1559_v55 }
 0x184   : > { %v1500_v48 = vpop.permute.xlu1 %1499  ;;  %v1495_v45 = vpop.permute.xlu0 %1494  ;;  %v1342_v21 = vadd.f32 %v1310_v27, %v1246_v6 }
 0x185   : > { %v1560_v28 = vmul.f32 %v1495_v45, %v2748_v59  ;;  %v1561_v39 = vmul.f32 %v1500_v48, %v2897_v34 }
 0x187   : > { %v1591_v51 = vadd.f32 %v1590_v36, %v1560_v28 }
 0x189   : > { %v1592_v29 = vadd.f32 %v1591_v51, %v1561_v39 }
 0x18b   : > { %v1593_v15 = vadd.f32 %v1592_v29, %v1562_v52 }
 0x18c   : > { %v1515_v58 = vpop.permute.xlu1 %1514  ;;  %v1510_v49 = vpop.permute.xlu0 %1509 }
 0x18d   : > { %v1563_v59 = vmul.f32 %v1510_v49, %v2762_v16  ;;  %v1564_v5 = vmul.f32 %v1515_v58, %v2900_v10  ;;  %v1568_v16 = vmul.f32 %v1535_v1, %v2778_v38 }
 0x18f   : > { %v1594_v18 = vadd.f32 %v1593_v15, %v1563_v59 }
 0x191   : > { %v1595_v22 = vadd.f32 %v1594_v18, %v1564_v5 }
 0x193   : > { %v1596_v54 = vadd.f32 %v1595_v22, %v1565_v53 }
 0x194   : > { %v1530_v17 = vpop.permute.xlu1 %1529  ;;  %v1525_v35 = vpop.permute.xlu0 %1524 }
 0x195   : > { %v1566_v50 = vmul.f32 %v1525_v35, %v1342_v21  ;;  %v1567_v40 = vmul.f32 %v1530_v17, %v2754_v57 }
 0x197   : > { %v1597_v56 = vadd.f32 %v1596_v54, %v1566_v50 }
 0x199   : > { %v1598_v12 = vadd.f32 %v1597_v56, %v1567_v40 }
 0x19b   : > { %v1599_v44 = vadd.f32 %v1598_v12, %v1568_v16 }
 0x19d   : > { %v1600_v37 = vrot.slane %v1599_v44, 4 }
 0x19f   : > { %v1601_v61 = vadd.f32 %v1600_v37, %v1599_v44 }
 0x1a1   : > { %v1602_v33 = vrot.slane %v1601_v61, 2 }
 0x1a3   : > { %v1603_v23 = vadd.f32 %v1602_v33, %v1601_v61 }
 0x1a5   : > { %v1604_v62 = vrot.slane %v1603_v23, 1 }
 0x1a7   : > { %v1605_v57 = vadd.f32 %v1604_v62, %v1603_v23 }
 0x1a9   : > { %v1608_v38 = vadd.f32 %v1607_v2, %v1605_v57 }
 0x1ab   : > { %1609 = vst [vmem:[%s285_s24] sm:$0x1] %v1608_v38 }
 0x1ac   : > { %1979 = shalt.err (!%p1976_p5)
}
 0x1ad   : > { %1909 = dma.vmem_to_hbm [thread:$0]  (%p2088_p6), %s1622_s26, 16, %s1624_s27, %s1611_s6  }
 0x1ae PF: > { %s1635_s19 = sand.u32 1, %s2002_s20   ;;  %p1912_p7 = pnand %p1686_p9, %p2092_p8 }
 0x1af   : > { %s1636_s13 = scalar_lea.sflag [#allocation5], %s1635_s19 }
 0x1b0   : > { %p1913_p10 = pneg %p1912_p7 }
 0x1b2   : > { %1997 = dma.done.wait (%p1913_p10), %s1636_s13, 16  }
 0x1b3   : > { %1999 = vsyncadd (%p1913_p10), %s1636_s13, 4294967280  ;;  %p16_p11 = scmp.ge.s32.totalorder %s2073_s25, 4   ;;  %s2901_s20 = smov %s2006_s21 }
 0x1b4   : > { %s2902_s21 = smov %s2010_s22  ;;  %s2903_s22 = smov %s2086_s28 }
 0x1b5   : > { %s2904_s23 = smov %s2073_s25  ;;  %18 = sbr.rel (!%p16_p11) target bundleno = 5 (0x5), region = 121 }
 0x1ba   :  { %1641 = vsyncpa [#allocation5], 1 }
 0x1bb   :  { %1643 = vsyncpa [#allocation5 + $0x1], 1 }

</bundles_post_ra>
